<compile_context>
chip_gen: v6e
topology: v6e:2x2x1
jax: 0.10.0
libtpu: 0.0.40
codegen_flags: <defaults>
</compile_context>

<pallas_src>
import jax
import jax.numpy as jnp
from jax.experimental import pallas as pl
from jax.experimental.pallas import tpu as pltpu


def _hbm_copy_kernel(x_hbm_ref, o_hbm_ref, sem):
    # Whole-array HBM -> HBM DMA: one descriptor, no VMEM round-trip.
    cp = pltpu.make_async_copy(x_hbm_ref, o_hbm_ref, sem)
    cp.start()
    cp.wait()


def gpt_forward(x, dummy_param=None, *, donate_input=True):
    """Pallas equivalent of GPT.forward(x) -> x.

    dummy_param is accepted for parity with the nn.Module __init__ but, exactly
    as in the reference, it does not participate in the computation.

    donate_input=True returns `x` itself (zero cost, same semantics as the
    PyTorch module returning its input tensor). donate_input=False produces a
    freshly materialized copy via a single HBM->HBM DMA.
    """
    if donate_input:
        # Identity: zero HBM traffic, zero kernel launches.
        return x

    itemsize = jnp.dtype(x.dtype).itemsize
    nbytes = x.size * itemsize
    return pl.pallas_call(
        _hbm_copy_kernel,
        out_shape=jax.ShapeDtypeStruct(x.shape, x.dtype),
        in_specs=[pl.BlockSpec(memory_space=pl.ANY)],
        out_specs=pl.BlockSpec(memory_space=pl.ANY),
        scratch_shapes=[pltpu.SemaphoreType.DMA(())],
        cost_estimate=pl.CostEstimate(
            flops=0,
            transcendentals=0,
            bytes_accessed=2 * nbytes,
        ),
    )(x)


if __name__ == "__main__":
    key = jax.random.PRNGKey(0)
    # Deterministic "parameters": the module only holds a dummy zero param.
    dummy_param = jnp.zeros((1,), dtype=jnp.float32)

    # Small GPT-style activation slab: batch=2, seq=8, hidden=32 (f32).
    x = jax.random.normal(key, (2, 8, 32), dtype=jnp.float32)

    # 1) Default path: identity with no kernel launch, no data movement.
    y_id = jax.block_until_ready(gpt_forward(x, dummy_param, donate_input=True))
    assert y_id.shape == x.shape and y_id.dtype == x.dtype
    assert bool(jnp.all(y_id == x))

    # 2) Materialized-copy path: single HBM->HBM DMA (exercises the kernel).
    y_cp = jax.block_until_ready(gpt_forward(x, dummy_param, donate_input=False))
    assert y_cp.shape == x.shape and y_cp.dtype == x.dtype
    assert bool(jnp.all(y_cp == x))

    # 3) bf16 activations through the same DMA copy path.
    xb = jax.random.normal(jax.random.PRNGKey(1), (64, 512), jnp.float32)
    xb = xb.astype(jnp.bfloat16)
    yb = jax.block_until_ready(gpt_forward(xb, dummy_param, donate_input=False))
    assert yb.shape == xb.shape and yb.dtype == xb.dtype
    assert bool(jnp.all(yb == xb))

    # 4) 1-D input (previous version's robustness gap): HBM->HBM DMA handles
    #    arbitrary shapes with no (8,128) block-shape constraint.
    x1 = jnp.arange(1000, dtype=jnp.int32)
    y1 = jax.block_until_ready(gpt_forward(x1, dummy_param, donate_input=False))
    assert y1.shape == x1.shape and y1.dtype == x1.dtype
    assert bool(jnp.all(y1 == x1))

    print("KERNEL_OK")
</pallas_src>

<mosaic_0001>
module attributes {stable_mosaic.version = 11 : i64} {
  func.func @_hbm_copy_kernel(%arg0: memref<2x8x32xf32, #tpu.memory_space<any>>, %arg1: memref<2x8x32xf32, #tpu.memory_space<any>>, %arg2: memref<!tpu.dma_semaphore, #tpu.memory_space<semaphore_mem>>) attributes {dimension_semantics = [], scalar_prefetch = 0 : i64, scratch_operands = 1 : i64, tpu.core_type = #tpu.core_type<tc>} {
    tpu.enqueue_dma source(%arg0 : memref<2x8x32xf32, #tpu.memory_space<any>>) target(%arg1 : memref<2x8x32xf32, #tpu.memory_space<any>>) target_semaphore(%arg2 : memref<!tpu.dma_semaphore, #tpu.memory_space<semaphore_mem>>)
    tpu.wait_dma2 semaphore(%arg2 : memref<!tpu.dma_semaphore, #tpu.memory_space<semaphore_mem>>) src(%arg0 : memref<2x8x32xf32, #tpu.memory_space<any>>) dst(%arg1 : memref<2x8x32xf32, #tpu.memory_space<any>>)
    return
  }
}

</mosaic_0001>

<bundles_post_ra>
// kernel: tpu_custom_call.1
= control target key start
LH: loop header
LB: loop body
LE: loop exit
PB: predicated region body
PF: predicated region fallthrough
CT: control target
= control target key end

     0   :  { %s29_s6 = smov [#allocation2]   ;;  %s30_s7 = smov 131072   ;;  %s48_s0 = inlined_call_operand.hbm [shape: f32[2,8,32], index: 0, kind: input, shape index: {}]   ;;  %s49_s1 = inlined_call_operand.hbm [shape: f32[2,8,32], index: 1, kind: output, shape index: {}]  }
   0x1   :  { %s31_s8 = smov 0  }
   0x2   :  { %12 = dma.general %s48_s0, 256, %s49_s1, %s29_s6, %s30_s7, [#allocation4], %s31_s8, 0  }
   0x3   :  { %27 = dma.done.wait [#allocation2], 256 }
   0x4   :  { %28 = vsyncadd [#allocation2], 4294967040 }
   0x5   :  { %17 = vsyncmov [#allocation2] }
   0x8   :  { %s18_s13 = vpop.sfrf %17 }
   0x9   :  { %p23_p0 = scmp.ne.s32.totalorder %s18_s13, 0 }
   0xb   :  { %22 = shalt.err (%p23_p0)  }

</bundles_post_ra>
